<compile_context>
chip_gen: v6e
topology: v6e:2x2x1
jax: 0.10.0
libtpu: 0.0.40
codegen_flags: <defaults>
</compile_context>

<pallas_src>
import functools

import jax
import jax.numpy as jnp
from jax.experimental import pallas as pl
from jax.experimental.pallas import tpu as pltpu

_LANE = 128                                # vreg lane width
_CHUNK_R = 256                             # rows folded per inner step
_TARGET_BLOCK_BYTES = 8 * 1024 * 1024      # per input buffer (double-buffered)
_VMEM_LIMIT_BYTES = 40 * 1024 * 1024       # raised scoped VMEM, < v7x 64 MiB phys


def _round_up(x, m):
    return (x + m - 1) // m * m


def _fold_rowmax_to_lanes(x_ref, r0, r1, *, col_start, total_cols, mask_tail):
    """Max-fold every column of x_ref[r0:r1, :] down to at most 128 lanes.

    Full 128-wide groups are folded with elementwise maxima on the VPU; a
    non-multiple-of-128 tail re-uses the last 128 columns (max is idempotent,
    so the overlap is harmless).  When mask_tail is set (column-split path),
    lanes whose *global* column index is >= total_cols are forced to -inf so
    Pallas' padded reads of a partial column block cannot corrupt the max.
    Result is float32 with shape (r1 - r0, min(cols, 128)).
    """
    cols = x_ref.shape[-1]
    rchunk = r1 - r0

    def load(c0, width):
        v = x_ref[r0:r1, c0:c0 + width].astype(jnp.float32)
        if mask_tail:
            lane = jax.lax.broadcasted_iota(jnp.int32, (rchunk, width), 1)
            v = jnp.where(col_start + c0 + lane < total_cols, v, -jnp.inf)
        return v

    if cols <= _LANE:
        return load(0, cols)
    m = load(0, _LANE)
    for g in range(1, cols // _LANE):
        m = jnp.maximum(m, load(g * _LANE, _LANE))
    if cols % _LANE:
        m = jnp.maximum(m, load(cols - _LANE, _LANE))
    return m


def _store_lane_dense(o_ref, m, r0, r1):
    """Store (per-row max of m) - 1.0 into o_ref[:, r0:r1], lane-dense.

    One XLU transpose moves the chunk's rows onto the lane axis so the final
    reduce is a cross-sublane max and the store is an unmasked, lane-dense vst
    (the XLU is otherwise idle in this kernel).
    """
    if m.shape[-1] < _LANE:  # pad lanes to a full vreg width with -inf
        pad = jnp.full((m.shape[0], _LANE - m.shape[-1]), -jnp.inf, jnp.float32)
        m = jnp.concatenate([m, pad], axis=-1)
    mt = jnp.transpose(m, (1, 0))                      # (128, rchunk)
    res = jnp.max(mt, axis=0, keepdims=True) - 1.0     # (1, rchunk)
    o_ref[:, r0:r1] = res.astype(o_ref.dtype)


def _rowmax_kernel(x_ref, o_ref, *, chunk):
    # x_ref: (block_r, cols) VMEM; o_ref: (1, block_r) VMEM (lane-dense).
    block_r = x_ref.shape[0]
    cols = x_ref.shape[-1]
    for r0 in range(0, block_r, chunk):
        m = _fold_rowmax_to_lanes(x_ref, r0, r0 + chunk,
                                  col_start=0, total_cols=cols,
                                  mask_tail=False)
        _store_lane_dense(o_ref, m, r0, r0 + chunk)


def _rowmax_colsplit_kernel(x_ref, o_ref, acc_ref, *, chunk, block_c,
                            total_cols, mask_tail):
    # x_ref: (block_r, block_c); o_ref: (1, block_r); acc_ref: (block_r, 128) f32.
    j = pl.program_id(1)
    block_r = x_ref.shape[0]

    @pl.when(j == 0)
    def _init():
        acc_ref[...] = jnp.full(acc_ref.shape, -jnp.inf, jnp.float32)

    col_start = j * block_c
    for r0 in range(0, block_r, chunk):
        m = _fold_rowmax_to_lanes(x_ref, r0, r0 + chunk,
                                  col_start=col_start, total_cols=total_cols,
                                  mask_tail=mask_tail)
        acc_ref[r0:r0 + chunk, :] = jnp.maximum(acc_ref[r0:r0 + chunk, :], m)

    @pl.when(j == pl.num_programs(1) - 1)
    def _finalize():
        for r0 in range(0, block_r, chunk):
            _store_lane_dense(o_ref, acc_ref[r0:r0 + chunk, :], r0, r0 + chunk)


def maxpool_full_minus_one(x_nchw: jax.Array) -> jax.Array:
    """Global spatial max pool (kernel == H == W) followed by `- 1.0`.

    x_nchw: (N, C, H, W), floating point.  Returns (N, C, 1, 1).
    """
    n, c, h, w = x_nchw.shape
    rows, cols = n * c, h * w
    dtype = x_nchw.dtype
    itemsize = jnp.dtype(dtype).itemsize
    sub = {4: 8, 2: 16, 1: 32}.get(itemsize, 8)  # sublane packing granularity

    x2d = x_nchw.reshape(rows, cols)

    # Rows per block allowed by the per-buffer VMEM budget.
    max_r_vmem = (_TARGET_BLOCK_BYTES // (cols * itemsize)) // sub * sub

    if max_r_vmem >= sub:
        # ---- common path: one full-width row block per grid step -----------
        rows_up = _round_up(rows, sub)
        block_r = min(max_r_vmem, rows_up)
        # Give the grid >= 2 row blocks on inputs big enough to matter so the
        # "parallel" row axis can be sharded across both v7x TensorCores.
        if rows_up >= 2 * sub and rows * cols * itemsize > 4 * 1024 * 1024:
            block_r = min(block_r, max(_round_up(pl.cdiv(rows, 2), sub), sub))
        if block_r > _CHUNK_R:
            block_r = block_r // _CHUNK_R * _CHUNK_R  # 128-aligned lane stores
        chunk = min(block_r, _CHUNK_R)
        nb_r = pl.cdiv(rows, block_r)

        out2 = pl.pallas_call(
            functools.partial(_rowmax_kernel, chunk=chunk),
            out_shape=jax.ShapeDtypeStruct((nb_r, block_r), dtype),
            grid_spec=pl.GridSpec(
                grid=(nb_r,),
                in_specs=[pl.BlockSpec((block_r, cols), lambda i: (i, 0))],
                out_specs=pl.BlockSpec((1, block_r), lambda i: (i, 0)),
            ),
            compiler_params=pltpu.CompilerParams(
                dimension_semantics=("parallel",),
                vmem_limit_bytes=_VMEM_LIMIT_BYTES,
            ),
            cost_estimate=pl.CostEstimate(
                flops=rows * cols,
                transcendentals=0,
                bytes_accessed=rows * cols * itemsize + nb_r * block_r * itemsize,
            ),
        )(x2d)
    else:
        # ---- huge-spatial fallback: column (reduction) axis on the grid ----
        block_r = min(_CHUNK_R, _round_up(rows, sub))
        chunk = block_r
        block_c = max(
            _LANE,
            (_TARGET_BLOCK_BYTES // (block_r * itemsize)) // _LANE * _LANE)
        nb_r = pl.cdiv(rows, block_r)
        nb_c = pl.cdiv(cols, block_c)

        out2 = pl.pallas_call(
            functools.partial(_rowmax_colsplit_kernel, chunk=chunk,
                              block_c=block_c, total_cols=cols,
                              mask_tail=(cols % block_c != 0)),
            out_shape=jax.ShapeDtypeStruct((nb_r, block_r), dtype),
            grid_spec=pltpu.PrefetchScalarGridSpec(
                num_scalar_prefetch=0,
                grid=(nb_r, nb_c),
                in_specs=[pl.BlockSpec((block_r, block_c), lambda i, j: (i, j))],
                out_specs=pl.BlockSpec((1, block_r), lambda i, j: (i, 0)),
                scratch_shapes=[pltpu.VMEM((block_r, _LANE), jnp.float32)],
            ),
            compiler_params=pltpu.CompilerParams(
                dimension_semantics=("parallel", "arbitrary"),
                vmem_limit_bytes=_VMEM_LIMIT_BYTES,
            ),
            cost_estimate=pl.CostEstimate(
                flops=rows * cols,
                transcendentals=0,
                bytes_accessed=rows * cols * itemsize + nb_r * block_r * itemsize,
            ),
        )(x2d)

    # Lane-dense (nb_r, block_r) result -> flatten, drop garbage rows, reshape.
    return out2.reshape(nb_r * block_r)[:rows].reshape(n, c, 1, 1)


if __name__ == "__main__":
    # Model3 applies MaxPool2d(32) to 32x32 spatial inputs (kernel == H == W),
    # so spatial must stay 32; keep batch/channels small.
    fwd = jax.jit(maxpool_full_minus_one)

    key = jax.random.PRNGKey(0)
    x = jax.random.normal(key, (2, 3, 32, 32), dtype=jnp.float32)
    out = jax.block_until_ready(fwd(x))
    ref = jnp.max(x, axis=(2, 3), keepdims=True) - 1.0
    assert out.shape == (2, 3, 1, 1)
    assert jnp.allclose(out, ref, atol=1e-6, rtol=1e-6)

    # Larger self-check: multiple row blocks with a partial last block (the
    # no-pad path), 256-row chunked fold and 128-aligned lane-dense stores.
    x_big = jax.random.normal(jax.random.PRNGKey(1), (6, 200, 32, 32),
                              dtype=jnp.float32)
    out_big = jax.block_until_ready(fwd(x_big))
    ref_big = jnp.max(x_big, axis=(2, 3), keepdims=True) - 1.0
    assert jnp.allclose(out_big, ref_big, atol=1e-6, rtol=1e-6)

    print("KERNEL_OK")
</pallas_src>

<mosaic_0001>
module attributes {stable_mosaic.version = 11 : i64} {
  func.func @_rowmax_kernel(%arg0: i32, %arg1: memref<8x1024xf32, #tpu.memory_space<vmem>>, %arg2: memref<1x8xf32, #tpu.memory_space<vmem>>) attributes {dimension_semantics = [#tpu.dimension_semantics<parallel>], iteration_bounds = array<i64: 1>, scalar_prefetch = 0 : i64, scratch_operands = 0 : i64, tpu.core_type = #tpu.core_type<tc>, window_params = [{transform_indices = @transform_0, window_bounds = array<i64: 8, 1024>}, {transform_indices = @transform_1, window_bounds = array<i64: 1, 8>}]} {
    %c0 = arith.constant 0 : index
    %c0_0 = arith.constant 0 : index
    %0 = vector.load %arg1[%c0, %c0_0] : memref<8x1024xf32, #tpu.memory_space<vmem>>, vector<8x128xf32>
    %c0_1 = arith.constant 0 : index
    %c128 = arith.constant 128 : index
    %1 = vector.load %arg1[%c0_1, %c128] : memref<8x1024xf32, #tpu.memory_space<vmem>>, vector<8x128xf32>
    %2 = arith.maximumf %0, %1 : vector<8x128xf32>
    %c0_2 = arith.constant 0 : index
    %c256 = arith.constant 256 : index
    %3 = vector.load %arg1[%c0_2, %c256] : memref<8x1024xf32, #tpu.memory_space<vmem>>, vector<8x128xf32>
    %4 = arith.maximumf %2, %3 : vector<8x128xf32>
    %c0_3 = arith.constant 0 : index
    %c384 = arith.constant 384 : index
    %5 = vector.load %arg1[%c0_3, %c384] : memref<8x1024xf32, #tpu.memory_space<vmem>>, vector<8x128xf32>
    %6 = arith.maximumf %4, %5 : vector<8x128xf32>
    %c0_4 = arith.constant 0 : index
    %c512 = arith.constant 512 : index
    %7 = vector.load %arg1[%c0_4, %c512] : memref<8x1024xf32, #tpu.memory_space<vmem>>, vector<8x128xf32>
    %8 = arith.maximumf %6, %7 : vector<8x128xf32>
    %c0_5 = arith.constant 0 : index
    %c640 = arith.constant 640 : index
    %9 = vector.load %arg1[%c0_5, %c640] : memref<8x1024xf32, #tpu.memory_space<vmem>>, vector<8x128xf32>
    %10 = arith.maximumf %8, %9 : vector<8x128xf32>
    %c0_6 = arith.constant 0 : index
    %c768 = arith.constant 768 : index
    %11 = vector.load %arg1[%c0_6, %c768] : memref<8x1024xf32, #tpu.memory_space<vmem>>, vector<8x128xf32>
    %12 = arith.maximumf %10, %11 : vector<8x128xf32>
    %c0_7 = arith.constant 0 : index
    %c896 = arith.constant 896 : index
    %13 = vector.load %arg1[%c0_7, %c896] : memref<8x1024xf32, #tpu.memory_space<vmem>>, vector<8x128xf32>
    %14 = arith.maximumf %12, %13 : vector<8x128xf32>
    %15 = tpu.transpose %14, [1, 0] : vector<8x128xf32> -> vector<128x8xf32>
    %cst = arith.constant dense<0xFF800000> : vector<8xf32>
    %16 = vector.multi_reduction <maximumf>, %15, %cst [0] : vector<128x8xf32> to vector<8xf32>
    %17 = vector.shape_cast %16 : vector<8xf32> to vector<1x8xf32>
    %cst_8 = arith.constant 1.000000e+00 : f32
    %18 = vector.broadcast %cst_8 : f32 to vector<1x8xf32>
    %19 = arith.subf %17, %18 : vector<1x8xf32>
    %c0_9 = arith.constant 0 : index
    %c0_10 = arith.constant 0 : index
    %20 = vector.load %arg2[%c0_9, %c0_10] : memref<1x8xf32, #tpu.memory_space<vmem>>, vector<1x8xf32>
    tpu.vector_store %arg2[%c0_9, %c0_10], %19 {strides = array<i32>} : memref<1x8xf32, #tpu.memory_space<vmem>>, vector<1x8xf32>,
    return
  }
  func.func @transform_0(%arg0: i32) -> (i32, i32) {
    %c0_i32 = arith.constant 0 : i32
    %c0_i32_0 = arith.constant 0 : i32
    return %arg0, %c0_i32 : i32, i32
  }
  func.func @transform_1(%arg0: i32) -> (i32, i32) {
    %c0_i32 = arith.constant 0 : i32
    %c0_i32_0 = arith.constant 0 : i32
    return %arg0, %c0_i32 : i32, i32
  }
}

</mosaic_0001>

<bundles_post_ra>
// kernel: maxpool_full_minus_one.1
= control target key start
LH: loop header
LB: loop body
LE: loop exit
PB: predicated region body
PF: predicated region fallthrough
CT: control target
= control target key end

     0   :  { %vm55_vm0 = vcmask 64512   ;;  %vm94_vm1 = vcmask 57344   ;;  %s155_s0 = inlined_call_operand.vmem [shape: f32[6,1024], index: 0, kind: input, shape index: {}]   ;;  %s156_s1 = inlined_call_operand.vmem [shape: f32[1,8], index: 1, kind: output, shape index: {}]  }
   0x1   :  { %v8_v0 = vld [vmem:[%s155_s0] sm:$0xff]  ;;  %v9_v1 = vld [vmem:[%s155_s0 + $0x8] sm:$0xff]  ;;  %v11_v2 = vld [vmem:[%s155_s0 + $0x10] sm:$0xff] }
   0x2   :  { %v10_v3 = vmax.f32 %v8_v0, %v9_v1  ;;  %v13_v4 = vld [vmem:[%s155_s0 + $0x18] sm:$0xff]  ;;  %v15_v6 = vld [vmem:[%s155_s0 + $0x20] sm:$0xff]  ;;  %v17_v8 = vld [vmem:[%s155_s0 + $0x28] sm:$0xff] }
   0x3   :  { %v19_v10 = vld [vmem:[%s155_s0 + $0x30] sm:$0xff]  ;;  %v21_v12 = vld [vmem:[%s155_s0 + $0x38] sm:$0xff] }
   0x4   :  { %v12_v5 = vmax.f32 %v10_v3, %v11_v2 }
   0x6   :  { %v14_v7 = vmax.f32 %v12_v5, %v13_v4 }
   0x8   :  { %v16_v9 = vmax.f32 %v14_v7, %v15_v6 }
   0xa   :  { %v18_v11 = vmax.f32 %v16_v9, %v17_v8 }
   0xc   :  { %v20_v13 = vmax.f32 %v18_v11, %v19_v10 }
   0xe   :  { %v22_v14 = vmax.f32 %v20_v13, %v21_v12 }
  0x10   :  { %23 = vxpose.xlu0.b32.start.end [1/1] (short) %v22_v14, 128 }
  0x8c   :  { %v39_v15 = vpop.trf.xlu0 }
  0x8d   :  { %v56_v35 = vsel %vm55_vm0, %v39_v15, -inf }
  0x90   :  { %v40_v16 = vpop.trf.xlu0 }
  0x91   :  { %v57_v30 = vsel %vm55_vm0, %v40_v16, -inf }
  0x94   :  { %v41_v17 = vpop.trf.xlu0 }
  0x95   :  { %v58_v36 = vsel %vm55_vm0, %v41_v17, -inf }
  0x98   :  { %v42_v18 = vpop.trf.xlu0 }
  0x99   :  { %v59_v37 = vsel %vm55_vm0, %v42_v18, -inf }
  0x9c   :  { %v43_v19 = vpop.trf.xlu0 }
  0x9d   :  { %v60_v31 = vsel %vm55_vm0, %v43_v19, -inf }
  0x9e   :  { %v61_v44 = vmax.f32 %v56_v35, %v60_v31 }
  0xa0   :  { %v44_v20 = vpop.trf.xlu0 }
  0xa1   :  { %v62_v29 = vsel %vm55_vm0, %v44_v20, -inf }
  0xa2   :  { %v63_v38 = vmax.f32 %v57_v30, %v62_v29 }
  0xa4   :  { %v45_v21 = vpop.trf.xlu0 }
  0xa5   :  { %v64_v32 = vsel %vm55_vm0, %v45_v21, -inf }
  0xa6   :  { %v65_v45 = vmax.f32 %v58_v36, %v64_v32 }
  0xa8   :  { %v46_v22 = vpop.trf.xlu0 }
  0xa9   :  { %v66_v33 = vsel %vm55_vm0, %v46_v22, -inf }
  0xaa   :  { %v67_v46 = vmax.f32 %v59_v37, %v66_v33 }
  0xac   :  { %v47_v23 = vpop.trf.xlu0 }
  0xad   :  { %v68_v40 = vsel %vm55_vm0, %v47_v23, -inf }
  0xae   :  { %v69_v50 = vmax.f32 %v61_v44, %v68_v40 }
  0xb0   :  { %v48_v24 = vpop.trf.xlu0 }
  0xb1   :  { %v70_v34 = vsel %vm55_vm0, %v48_v24, -inf }
  0xb2   :  { %v71_v47 = vmax.f32 %v63_v38, %v70_v34 }
  0xb4   :  { %v49_v25 = vpop.trf.xlu0 }
  0xb5   :  { %v72_v41 = vsel %vm55_vm0, %v49_v25, -inf }
  0xb6   :  { %v73_v51 = vmax.f32 %v65_v45, %v72_v41 }
  0xb8   :  { %v50_v26 = vpop.trf.xlu0 }
  0xb9   :  { %v74_v42 = vsel %vm55_vm0, %v50_v26, -inf }
  0xba   :  { %v75_v52 = vmax.f32 %v67_v46, %v74_v42 }
  0xbc   :  { %v51_v27 = vpop.trf.xlu0 }
  0xbd   :  { %v76_v48 = vsel %vm55_vm0, %v51_v27, -inf }
  0xbe   :  { %v77_v56 = vmax.f32 %v69_v50, %v76_v48 }
  0xc0   :  { %v52_v28 = vpop.trf.xlu0 }
  0xc1   :  { %v78_v43 = vsel %vm55_vm0, %v52_v28, -inf }
  0xc2   :  { %v79_v53 = vmax.f32 %v71_v47, %v78_v43 }
  0xc4   :  { %v53_v39 = vpop.trf.xlu0  ;;  %v84_v59 = vmax.f32 %v77_v56, %v79_v53 }
  0xc5   :  { %v80_v49 = vsel %vm55_vm0, %v53_v39, -inf }
  0xc6   :  { %v81_v57 = vmax.f32 %v73_v51, %v80_v49 }
  0xc8   :  { %v54_v54 = vpop.trf.xlu0 }
  0xc9   :  { %v82_v55 = vsel %vm55_vm0, %v54_v54, -inf }
  0xca   :  { %v83_v58 = vmax.f32 %v75_v52, %v82_v55 }
  0xcc   :  { %v85_v60 = vmax.f32 %v81_v57, %v83_v58 }
  0xce   :  { %v86_v61 = vmax.f32 %v84_v59, %v85_v60 }
  0xd0   :  { %v87_v62 = vrot.slane %v86_v61, 4 }
  0xd2   :  { %v88_v63 = vmax.f32 %v86_v61, %v87_v62 }
  0xd4   :  { %v89_v0 = vrot.slane %v88_v63, 2 }
  0xd6   :  { %v90_v1 = vmax.f32 %v88_v63, %v89_v0 }
  0xd8   :  { %v91_v2 = vrot.slane %v90_v1, 1 }
  0xda   :  { %v92_v3 = vmax.f32 %v90_v1, %v91_v2 }
  0xdc   :  { %v100_v4 = vadd.f32 -1.0, %v92_v3 }
  0xde   :  { %95 = vst.msk [vmem:[%s156_s1] sm:$0x1] %vm94_vm1, %v100_v4 }

</bundles_post_ra>
